<compile_context>
chip_gen: v6e
topology: v6e:2x2x1
jax: 0.10.0
libtpu: 0.0.40
codegen_flags: <defaults>
</compile_context>

<pallas_src>
import jax
import jax.numpy as jnp
from jax.experimental import pallas as pl
from jax.experimental.pallas import tpu as pltpu

_LANE = 128
_SUBLANE = 8
_TARGET_BLOCK_ROWS = 4096   # 4096 rows * 128 lanes * 4 B = 2 MiB f32 per pipelined buffer
_CHUNK_ROWS = 128           # in-kernel accumulation chunk (16 f32 vregs per intermediate)


def _round_up(a, m):
    return (a + m - 1) // m * m


def _make_floss_kernel(d, tr, chunk, k_per, needs_mask):
    """Build the per-(split, sample, row-block) kernel.

    x_ref  : (1, tr, 128) logits block (f32 or bf16)
    t_ref  : (1, tr, 128) resized-target block (f32 or bf16)
    out_ref: (1, 1, 16, 128) per-(split, sample) partial sums; rows 0:8
             accumulate TP = sum(p*t), rows 8:16 accumulate H = sum(p+t).
             Accumulation stays lane-shaped (pure VPU, no per-step XLU reduce).
    """
    n_chunks = tr // chunk

    def kernel(x_ref, t_ref, out_ref):
        s = pl.program_id(0)
        k = pl.program_id(2)

        @pl.when(k == 0)
        def _():
            out_ref[...] = jnp.zeros_like(out_ref)

        # Logical (unclamped) row offset of this block; the index_map clamps
        # the DMA for overflow blocks, the mask below zeroes their contribution.
        row0 = (s * k_per + k) * tr

        def body(c, carry):
            acc_tp, acc_h = carry
            off = c * chunk
            x = x_ref[0, pl.ds(off, chunk), :].astype(jnp.float32)
            t = t_ref[0, pl.ds(off, chunk), :].astype(jnp.float32)
            # Exact sigmoid: one EUP tanh + VPU mul/add, no divide.
            p = 0.5 * (jnp.tanh(0.5 * x) + 1.0)
            if needs_mask:
                rows = jax.lax.broadcasted_iota(jnp.int32, (chunk, _LANE), 0)
                lanes = jax.lax.broadcasted_iota(jnp.int32, (chunk, _LANE), 1)
                flat = (row0 + off + rows) * _LANE + lanes
                valid = flat < d
                p = jnp.where(valid, p, 0.0)
                t = jnp.where(valid, t, 0.0)
            pt = (p * t).reshape(-1, _SUBLANE, _LANE)   # (chunk/8, 8, 128)
            ph = (p + t).reshape(-1, _SUBLANE, _LANE)   # sum(t)+sum(p) folded into one acc
            return acc_tp + jnp.sum(pt, axis=0), acc_h + jnp.sum(ph, axis=0)

        z = jnp.zeros((_SUBLANE, _LANE), jnp.float32)
        if n_chunks == 1:
            acc_tp, acc_h = body(0, (z, z))
        else:
            acc_tp, acc_h = jax.lax.fori_loop(0, n_chunks, body, (z, z))

        out_ref[0, 0, 0:_SUBLANE, :] += acc_tp
        out_ref[0, 0, _SUBLANE:, :] += acc_h

    return kernel


def _floss_partials(x_rows, t_rows, d, tr, chunk, n_splits, k_per, grid_k):
    """x_rows/t_rows: (N, R, 128).  Returns (splits, N, 16, 128) f32 partials."""
    n = x_rows.shape[0]
    needs_mask = (n_splits * k_per * tr * _LANE) != d
    kernel = _make_floss_kernel(d, tr, chunk, k_per, needs_mask)

    def in_map(s, i, k):
        kb = s * k_per + k
        # Clamp so overflow blocks re-read the last valid block (never OOB DMA
        # block indices); the in-kernel mask zeroes their contribution.
        return (i, jnp.minimum(kb, grid_k - 1), 0)

    return pl.pallas_call(
        kernel,
        out_shape=jax.ShapeDtypeStruct((n_splits, n, 2 * _SUBLANE, _LANE), jnp.float32),
        grid_spec=pltpu.PrefetchScalarGridSpec(
            num_scalar_prefetch=0,
            grid=(n_splits, n, k_per),
            in_specs=[
                pl.BlockSpec((1, tr, _LANE), in_map),
                pl.BlockSpec((1, tr, _LANE), in_map),
            ],
            out_specs=pl.BlockSpec((1, 1, 2 * _SUBLANE, _LANE),
                                   lambda s, i, k: (s, i, 0, 0)),
        ),
        compiler_params=pltpu.CompilerParams(
            dimension_semantics=("parallel", "parallel", "arbitrary"),
            vmem_limit_bytes=32 * 1024 * 1024,
        ),
    )(x_rows, t_rows)


def _nearest_resize_nchw_bf16(t, size):
    """torch F.interpolate(target.float(), size, mode='nearest'), gathered in bf16."""
    th, tw = t.shape[-2:]
    oh, ow = size
    ri = (jnp.arange(oh) * th // oh).astype(jnp.int32)
    ci = (jnp.arange(ow) * tw // ow).astype(jnp.int32)
    # bf16 is exact for {0,1} edge targets; cast BEFORE the gather halves traffic.
    tb = t.astype(jnp.bfloat16)
    # TODO(synk): fuse this gather into the kernel via scalar-prefetched row/col
    # index tables so the target is read once from its original buffer.
    return jnp.take(jnp.take(tb, ri, axis=2), ci, axis=3)


def _finalize(partials):
    """(splits, N, 16, 128) partials -> scalar FLoss (batch mean, inf -> 0)."""
    tp = jnp.sum(partials[:, :, :_SUBLANE, :], axis=(0, 2, 3))
    h = jnp.sum(partials[:, :, _SUBLANE:, :], axis=(0, 2, 3))
    fmeasure = 2.0 * tp / (h + jnp.float32(1e-10))   # (1+beta)*TP/(H+EPS), beta = 1
    fl = jnp.mean(-jnp.log(fmeasure))                # log_like = True, .mean() over batch
    # forward(): f_loss = 0 if f_loss == inf
    return jnp.where(fl == jnp.inf, jnp.float32(0.0), fl)


@jax.jit
def _per_item_loss(item, target):
    n, c, h, w = item.shape
    d = c * h * w

    # --- target resize (identity fast-path: zero extra HBM passes) ---
    if (h, w) == tuple(target.shape[-2:]):
        item_target = target.astype(jnp.float32)      # torch target.float(); no-op if f32
    else:
        item_target = _nearest_resize_nchw_bf16(target, (h, w))

    if item.dtype not in (jnp.dtype(jnp.float32), jnp.dtype(jnp.bfloat16)):
        item = item.astype(jnp.float32)

    # --- lay out as (N, R, 128) lane rows; no copies in the common case ---
    r = pl.cdiv(d, _LANE)
    r_rows = max(r, 2 * _SUBLANE)                     # >= 16 rows (bf16 sublane packing)
    pad = r_rows * _LANE - d
    x_flat = item.reshape(n, -1)                      # free view
    t_flat = item_target.reshape(n, -1)               # free view
    if pad:                                           # only if d % 128 != 0 or tiny input
        x_flat = jnp.pad(x_flat, ((0, 0), (0, pad)))
        t_flat = jnp.pad(t_flat, ((0, 0), (0, pad)))
    x_rows = x_flat.reshape(n, r_rows, _LANE)
    t_rows = t_flat.reshape(n, r_rows, _LANE)

    # --- block / chunk selection (tr <= r_rows, multiple of 16; ragged tail masked) ---
    if r_rows <= 256:
        tr = (r_rows // (2 * _SUBLANE)) * (2 * _SUBLANE)
    else:
        tr = min(_TARGET_BLOCK_ROWS, (r_rows // 256) * 256)
    chunk = _CHUNK_ROWS if (tr % _CHUNK_ROWS == 0 and tr > _CHUNK_ROWS) else tr

    grid_k = pl.cdiv(r_rows, tr)
    n_splits = 2 if grid_k >= 2 else 1                # v7x megacore split for small N
    k_per = pl.cdiv(grid_k, n_splits)

    partials = _floss_partials(x_rows, t_rows, d, tr, chunk, n_splits, k_per, grid_k)
    return _finalize(partials)


def edge_loss(inputs, target):
    """EdgeLoss.forward.  `inputs` is a tensor or tuple/list of NCHW tensors."""
    if not isinstance(inputs, (tuple, list)):
        inputs = (inputs,)
    # TODO(synk): fuse the multi-scale items into one pallas_call (concat row
    # blocks + scalar-prefetched per-item segment offsets) to amortize launch
    # and pipeline warm-up/drain on tiny scales.
    loss = jnp.float32(0.0)
    for item in inputs:
        loss = loss + _per_item_loss(item, target)
    return loss / len(inputs)


if __name__ == "__main__":
    key = jax.random.PRNGKey(0)
    k1, k2 = jax.random.split(key)

    # Small NCHW shapes: batch=2, channels=4, spatial=16
    x = jax.random.normal(k1, (2, 4, 16, 16), dtype=jnp.float32)             # logits
    target = (jax.random.uniform(k2, (2, 4, 16, 16)) > 0.5).astype(jnp.float32)

    out = edge_loss(x, target)
    out = jax.block_until_ready(out)

    # quick sanity check vs. pure-JAX reference
    p = jax.nn.sigmoid(x)
    tp = jnp.sum((p * target).reshape(2, -1), axis=1)
    hh = jnp.sum(target.reshape(2, -1), axis=1) + jnp.sum(p.reshape(2, -1), axis=1)
    ref = jnp.mean(-jnp.log(2.0 * tp / (hh + 1e-10)))
    assert jnp.allclose(out, ref, rtol=1e-5, atol=1e-5), (out, ref)

    print("KERNEL_OK")
</pallas_src>

<mosaic_0001>
module attributes {stable_mosaic.version = 11 : i64} {
  func.func @kernel(%arg0: i32, %arg1: i32, %arg2: i32, %arg3: memref<1x16x128xf32, #tpu.memory_space<vmem>>, %arg4: memref<1x16x128xf32, #tpu.memory_space<vmem>>, %arg5: memref<1x1x16x128xf32, #tpu.memory_space<vmem>>) attributes {dimension_semantics = [#tpu.dimension_semantics<parallel>, #tpu.dimension_semantics<parallel>, #tpu.dimension_semantics<arbitrary>], iteration_bounds = array<i64: 1, 2, 1>, scalar_prefetch = 0 : i64, scratch_operands = 0 : i64, tpu.core_type = #tpu.core_type<tc>, window_params = [{transform_indices = @transform_0, window_bounds = array<i64: 1, 16, 128>}, {transform_indices = @transform_1, window_bounds = array<i64: 1, 16, 128>}, {transform_indices = @transform_2, window_bounds = array<i64: 1, 1, 16, 128>}]} {
    %c0_i32 = arith.constant 0 : i32
    %0 = arith.cmpi eq, %arg2, %c0_i32 : i32
    %1 = arith.extui %0 : i1 to i32
    %c0_i32_0 = arith.constant 0 : i32
    %2 = arith.cmpi ne, %1, %c0_i32_0 : i32
    scf.if %2 {
      %cst_29 = arith.constant 0.000000e+00 : f32
      %52 = vector.broadcast %cst_29 : f32 to vector<1x1x16x128xf32>
      %c0_30 = arith.constant 0 : index
      %c0_31 = arith.constant 0 : index
      %c0_32 = arith.constant 0 : index
      %c0_33 = arith.constant 0 : index
      %53 = vector.load %arg5[%c0_30, %c0_31, %c0_32, %c0_33] : memref<1x1x16x128xf32, #tpu.memory_space<vmem>>, vector<1x1x16x128xf32>
      tpu.vector_store %arg5[%c0_30, %c0_31, %c0_32, %c0_33], %52 {strides = array<i32>} : memref<1x1x16x128xf32, #tpu.memory_space<vmem>>, vector<1x1x16x128xf32>,
    } else {
    }
    %c1_i32 = arith.constant 1 : i32
    %3 = arith.muli %arg0, %c1_i32 : i32
    %4 = arith.addi %3, %arg2 : i32
    %c16_i32 = arith.constant 16 : i32
    %5 = arith.muli %4, %c16_i32 : i32
    %cst = arith.constant 0.000000e+00 : f32
    %6 = vector.broadcast %cst : f32 to vector<8x128xf32>
    %c0 = arith.constant 0 : index
    %c0_1 = arith.constant 0 : index
    %c0_2 = arith.constant 0 : index
    %7 = vector.load %arg3[%c0, %c0_1, %c0_2] : memref<1x16x128xf32, #tpu.memory_space<vmem>>, vector<1x16x128xf32>
    %8 = vector.shape_cast %7 : vector<1x16x128xf32> to vector<16x128xf32>
    %c0_3 = arith.constant 0 : index
    %c0_4 = arith.constant 0 : index
    %c0_5 = arith.constant 0 : index
    %9 = vector.load %arg4[%c0_3, %c0_4, %c0_5] : memref<1x16x128xf32, #tpu.memory_space<vmem>>, vector<1x16x128xf32>
    %10 = vector.shape_cast %9 : vector<1x16x128xf32> to vector<16x128xf32>
    %cst_6 = arith.constant 5.000000e-01 : f32
    %11 = vector.broadcast %cst_6 : f32 to vector<16x128xf32>
    %12 = arith.mulf %11, %8 : vector<16x128xf32>
    %13 = math.tanh %12 : vector<16x128xf32>
    %cst_7 = arith.constant 1.000000e+00 : f32
    %14 = vector.broadcast %cst_7 : f32 to vector<16x128xf32>
    %15 = arith.addf %13, %14 : vector<16x128xf32>
    %cst_8 = arith.constant 5.000000e-01 : f32
    %16 = vector.broadcast %cst_8 : f32 to vector<16x128xf32>
    %17 = arith.mulf %16, %15 : vector<16x128xf32>
    %18 = tpu.iota {dimensions = array<i32: 0>} : vector<16x128xi32>
    %19 = tpu.iota {dimensions = array<i32: 1>} : vector<16x128xi32>
    %c0_i32_9 = arith.constant 0 : i32
    %20 = arith.addi %5, %c0_i32_9 : i32
    %21 = vector.broadcast %20 : i32 to vector<16x128xi32>
    %22 = arith.addi %21, %18 : vector<16x128xi32>
    %c128_i32 = arith.constant 128 : i32
    %23 = vector.broadcast %c128_i32 : i32 to vector<16x128xi32>
    %24 = arith.muli %22, %23 : vector<16x128xi32>
    %25 = arith.addi %24, %19 : vector<16x128xi32>
    %c1024_i32 = arith.constant 1024 : i32
    %26 = vector.broadcast %c1024_i32 : i32 to vector<16x128xi32>
    %27 = arith.cmpi slt, %25, %26 : vector<16x128xi32>
    %cst_10 = arith.constant 0.000000e+00 : f32
    %28 = vector.broadcast %cst_10 : f32 to vector<16x128xf32>
    %29 = arith.select %27, %17, %28 : vector<16x128xi1>, vector<16x128xf32>
    %cst_11 = arith.constant 0.000000e+00 : f32
    %30 = vector.broadcast %cst_11 : f32 to vector<16x128xf32>
    %31 = arith.select %27, %10, %30 : vector<16x128xi1>, vector<16x128xf32>
    %32 = arith.mulf %29, %31 : vector<16x128xf32>
    %33 = vector.shape_cast %32 : vector<16x128xf32> to vector<2x8x128xf32>
    %34 = arith.addf %29, %31 : vector<16x128xf32>
    %35 = vector.shape_cast %34 : vector<16x128xf32> to vector<2x8x128xf32>
    %cst_12 = arith.constant dense<0.000000e+00> : vector<8x128xf32>
    %36 = vector.multi_reduction <add>, %33, %cst_12 [0] : vector<2x8x128xf32> to vector<8x128xf32>
    %37 = arith.addf %6, %36 : vector<8x128xf32>
    %cst_13 = arith.constant dense<0.000000e+00> : vector<8x128xf32>
    %38 = vector.multi_reduction <add>, %35, %cst_13 [0] : vector<2x8x128xf32> to vector<8x128xf32>
    %39 = arith.addf %6, %38 : vector<8x128xf32>
    %c0_14 = arith.constant 0 : index
    %c0_15 = arith.constant 0 : index
    %c0_16 = arith.constant 0 : index
    %c0_17 = arith.constant 0 : index
    %40 = vector.load %arg5[%c0_14, %c0_15, %c0_16, %c0_17] : memref<1x1x16x128xf32, #tpu.memory_space<vmem>>, vector<1x1x8x128xf32>
    %41 = vector.shape_cast %40 : vector<1x1x8x128xf32> to vector<8x128xf32>
    %42 = arith.addf %41, %37 : vector<8x128xf32>
    %c0_18 = arith.constant 0 : index
    %c0_19 = arith.constant 0 : index
    %c0_20 = arith.constant 0 : index
    %c0_21 = arith.constant 0 : index
    %43 = vector.load %arg5[%c0_18, %c0_19, %c0_20, %c0_21] : memref<1x1x16x128xf32, #tpu.memory_space<vmem>>, vector<1x1x8x128xf32>
    %44 = vector.shape_cast %43 : vector<1x1x8x128xf32> to vector<8x128xf32>
    %45 = vector.shape_cast %42 : vector<8x128xf32> to vector<1x1x8x128xf32>
    tpu.vector_store %arg5[%c0_18, %c0_19, %c0_20, %c0_21], %45 {strides = array<i32>} : memref<1x1x16x128xf32, #tpu.memory_space<vmem>>, vector<1x1x8x128xf32>,
    %c0_22 = arith.constant 0 : index
    %c0_23 = arith.constant 0 : index
    %c8 = arith.constant 8 : index
    %c0_24 = arith.constant 0 : index
    %46 = vector.load %arg5[%c0_22, %c0_23, %c8, %c0_24] : memref<1x1x16x128xf32, #tpu.memory_space<vmem>>, vector<1x1x8x128xf32>
    %47 = vector.shape_cast %46 : vector<1x1x8x128xf32> to vector<8x128xf32>
    %48 = arith.addf %47, %39 : vector<8x128xf32>
    %c0_25 = arith.constant 0 : index
    %c0_26 = arith.constant 0 : index
    %c8_27 = arith.constant 8 : index
    %c0_28 = arith.constant 0 : index
    %49 = vector.load %arg5[%c0_25, %c0_26, %c8_27, %c0_28] : memref<1x1x16x128xf32, #tpu.memory_space<vmem>>, vector<1x1x8x128xf32>
    %50 = vector.shape_cast %49 : vector<1x1x8x128xf32> to vector<8x128xf32>
    %51 = vector.shape_cast %48 : vector<8x128xf32> to vector<1x1x8x128xf32>
    tpu.vector_store %arg5[%c0_25, %c0_26, %c8_27, %c0_28], %51 {strides = array<i32>} : memref<1x1x16x128xf32, #tpu.memory_space<vmem>>, vector<1x1x8x128xf32>,
    return
  }
  func.func @transform_0(%arg0: i32, %arg1: i32, %arg2: i32) -> (i32, i32, i32) {
    %c1_i32 = arith.constant 1 : i32
    %0 = arith.muli %arg0, %c1_i32 : i32
    %1 = arith.addi %0, %arg2 : i32
    %c0_i32 = arith.constant 0 : i32
    %2 = arith.minsi %1, %c0_i32 : i32
    %c0_i32_0 = arith.constant 0 : i32
    %c0_i32_1 = arith.constant 0 : i32
    return %arg1, %2, %c0_i32_0 : i32, i32, i32
  }
  func.func @transform_1(%arg0: i32, %arg1: i32, %arg2: i32) -> (i32, i32, i32) {
    %c1_i32 = arith.constant 1 : i32
    %0 = arith.muli %arg0, %c1_i32 : i32
    %1 = arith.addi %0, %arg2 : i32
    %c0_i32 = arith.constant 0 : i32
    %2 = arith.minsi %1, %c0_i32 : i32
    %c0_i32_0 = arith.constant 0 : i32
    %c0_i32_1 = arith.constant 0 : i32
    return %arg1, %2, %c0_i32_0 : i32, i32, i32
  }
  func.func @transform_2(%arg0: i32, %arg1: i32, %arg2: i32) -> (i32, i32, i32, i32) {
    %c0_i32 = arith.constant 0 : i32
    %c0_i32_0 = arith.constant 0 : i32
    %c0_i32_1 = arith.constant 0 : i32
    return %arg0, %arg1, %c0_i32, %c0_i32_0 : i32, i32, i32, i32
  }
}

</mosaic_0001>

<bundles_post_ra>
// kernel: _per_item_loss.1
= control target key start
LH: loop header
LB: loop body
LE: loop exit
PB: predicated region body
PF: predicated region fallthrough
CT: control target
= control target key end

     0   :  { %s513_s9 = smov 0   ;;  %s515_s10 = smov 0   ;;  %s554_s0 = inlined_call_operand.vmem [shape: f32[2,16,128], index: 0, kind: input, shape index: {}]   ;;  %s555_s1 = inlined_call_operand.vmem [shape: f32[2,16,128], index: 1, kind: input, shape index: {}]   ;;  %s556_s2 = inlined_call_operand.vmem [shape: f32[1,2,16,128], index: 2, kind: output, shape index: {}]  }
   0x1   :  { %s517_s11 = smov 0  }
   0x2 LB: > { %s27_s12 = sadd.s32 1, %s492_s10  ;;  %p433_p0 = scmp.ge.s32.totalorder %s496_s11, 1  ;;  %s496_s11 = sphi %s517_s11, %s12_s11   ;;  %s492_s10 = sphi %s515_s10, %s558_s10   ;;  %s488_s9 = sphi %s513_s9, %s557_s9  }
   0x3   : > { %p29_p1 = scmp.ge.s32.totalorder %s27_s12, 2  ;;  %p181_p2 = scmp.lt.s32.totalorder %s496_s11, 3 }
   0x5   : > { %s560_s12 = smov (%p29_p1, %s27_s12), 0  ;;  %p182_p3 = pnand %p433_p0, %p181_p2 }
   0x6   : > { %p230_p4 = scmp.lt.s32.totalorder (!%p182_p3), %s488_s9, 1 }
   0x7   : > { %185 = sbr.rel (%p182_p3) target bundleno = 43 (0x2b), region = 28 }
   0xc   : > { %s562_s9 = smov (!%p230_p4, %s488_s9), 1  ;;  %v287_v0 = vlaneseq }
   0xd   : > { %s531_s13 = sshll.u32 %s562_s9, 4 }
   0xe   : > { %s237_s16 = scalar_lea.vmem %s554_s0, %s531_s13  ;;  %v288_v5 = vshrl.u32 %v287_v0, 7  ;;  %v291_v7 = vand.u32 127, %v287_v0  ;;  %s253_s19 = scalar_lea.vmem %s555_s1, %s531_s13 }
   0xf   : > { %v275_v1 = vld [vmem:[%s237_s16] sm:$0xff]  ;;  %v276_v2 = vld [vmem:[%s237_s16 + $0x8] sm:$0xff]  ;;  %s266_s22 = scalar_lea.vmem %s556_s2, %s531_s13 }
  0x10   : > { %v279_v3 = vmul.f32 0.5, %v275_v1  ;;  %v280_v4 = vmul.f32 0.5, %v276_v2  ;;  %v289_v6 = vadd.s32 8, %v288_v5  ;;  %v295_v8 = vmul.u32 128, %v288_v5  ;;  %v277_v13 = vld [vmem:[%s253_s19] sm:$0xff]  ;;  %v278_v15 = vld [vmem:[%s253_s19 + $0x8] sm:$0xff] }
  0x12   : > { %470 = vtanh.f32 %v279_v3  ;;  %v296_v9 = vmul.u32 128, %v289_v6  ;;  %v297_v10 = vadd.s32 %v295_v8, %v291_v7 }
  0x13   : > { %472 = vtanh.f32 %v280_v4 }
  0x14   : > { %v298_v11 = vadd.s32 %v296_v9, %v291_v7  ;;  %vm299_vm0 = vcmp.lt.s32.totalorder %v297_v10, 1024 }
  0x15   : > { %v303_v19 = vsel %vm299_vm0, %v277_v13, 0.0 }
  0x16   : > { %vm300_vm1 = vcmp.lt.s32.totalorder %v298_v11, 1024 }
  0x17   : > { %v304_v21 = vsel %vm300_vm1, %v278_v15, 0.0 }
  0x1f   : > { %v471_v12 = vpop.eup %470 }
  0x20   : > { %v473_v14 = vpop.eup %472  ;;  %v283_v16 = vadd.f32 1.0, %v471_v12 }
  0x21   : > { %v284_v17 = vadd.f32 1.0, %v473_v14 }
  0x22   : > { %v285_v18 = vmul.f32 0.5, %v283_v16 }
  0x23   : > { %v286_v20 = vmul.f32 0.5, %v284_v17 }
  0x24   : > { %v301_v22 = vsel %vm299_vm0, %v285_v18, 0.0 }
  0x25   : > { %v302_v23 = vsel %vm300_vm1, %v286_v20, 0.0  ;;  %v305_v24 = vmul.f32 %v303_v19, %v301_v22  ;;  %v307_v25 = vadd.f32 %v303_v19, %v301_v22 }
  0x26   : > { %v306_v26 = vmul.f32 %v304_v21, %v302_v23  ;;  %v308_v27 = vadd.f32 %v304_v21, %v302_v23 }
  0x28   : > { %v309_v28 = vadd.f32 %v306_v26, %v305_v24  ;;  %v311_v29 = vadd.f32 %v308_v27, %v307_v25 }
  0x2a   : > { %315 = vst [vmem:[%s266_s22] sm:$0xff] %v309_v28  ;;  %318 = vst [vmem:[%s266_s22 + $0x8] sm:$0xff] %v311_v29 }
  0x2b PF: > { %s12_s11 = sadd.s32 1, %s496_s11   ;;  %s557_s9 = smov %s492_s10 }
  0x2c   : > { %p9_p5 = scmp.ge.s32.totalorder %s12_s11, 4   ;;  %s558_s10 = smov %s560_s12 }
  0x2e   :  { %11 = sbr.rel (!%p9_p5) target bundleno = 2 (0x2), region = 65 }

</bundles_post_ra>
